<compile_context>
chip_gen: v5e
topology: v5e:2x2
jax: 0.10.0
libtpu: 0.0.40
codegen_flags: <defaults>
</compile_context>

<pallas_src>
import math

import jax
import jax.numpy as jnp
from jax import lax
from jax.experimental import pallas as pl
from jax.experimental.pallas import tpu as pltpu


_FALLBACK_VMEM_BYTES = 64 * 1024 * 1024  # v7x per-core VMEM (smallest target)


def _vmem_budget_bytes():
    """Conservative scoped-VMEM budget derived from the chip's capacity."""
    try:
        cap = pltpu.get_tpu_info().vmem_capacity_bytes
    except Exception:
        cap = _FALLBACK_VMEM_BYTES
    return int(min(100 * 1024 * 1024, cap * 3 // 4))


def _vmem_estimate_bytes(n, d, tq, with_outputs):
    """Rough per-step VMEM: pipelined blocks (x2 buffers) + (TQ,N) f32 temps."""
    f32, out_b = 4, 2
    b = 0
    b += 2 * n * d * f32                   # hidden block (double buffered)
    b += 2 * n * 2 * d * f32               # key-feature block
    b += 2 * (2 * d * d + 2 * d) * f32     # fused weight + bias (tiny)
    if with_outputs:
        b += 2 * 2 * tq * n * out_b        # pred + true bf16 output blocks
    b += 2 * tq * f32                      # ce block (tiny)
    live_tmp = 3 if with_outputs else 4    # concurrent (TQ, N) f32 Mosaic temps
    b += live_tmp * tq * n * f32
    b += 2 * tq * 2 * d * f32              # qf tile + sliced h tile
    return b


def _pick_query_tile(n, d, with_outputs, budget):
    candidates = [t for t in (512, 256, 128) if n % t == 0] or [n]
    for tq in candidates:
        if _vmem_estimate_bytes(n, d, tq, with_outputs) <= budget:
            return tq
    return candidates[-1]


def _compiler_params(budget):
    return pltpu.CompilerParams(
        dimension_semantics=("parallel", "parallel"),
        vmem_limit_bytes=budget)


# ----------------------------- kernels --------------------------------------


def feature_map_kernel(h_ref, w_ref, b_ref, f_ref):
    """kf = exp(h @ [Wk^T | -Wk^T] + [bk | -bk])  -> (TN, 2D) tile."""
    f_ref[0] = jnp.exp(
        jnp.dot(h_ref[0], w_ref[...], preferred_element_type=jnp.float32)
        + b_ref[...])


def _attend_tile(h_ref, kf_ref, wq_ref, bq_ref, qi, tq):
    """true/pred softmax rows for one (TQ, N) tile; returns f32 matrices."""
    d = h_ref.shape[-1]
    q0 = pl.multiple_of(qi * tq, tq)
    h_tile = h_ref[0, pl.ds(q0, tq), :]                                  # (TQ, D)

    # --- "true" attention: softmax(h h^T / sqrt(D)).  Logits are O(1-10), so
    # bf16 MXU operands are safe (single-pass); scale folded into the small
    # (TQ, D) query operand, never the (TQ, N) scores.
    hq = (h_tile * jnp.float32(1.0 / math.sqrt(d))).astype(jnp.bfloat16)
    hk = h_ref[0].astype(jnp.bfloat16)
    st = lax.dot_general(hq, hk, (((1,), (1,)), ((), ())),
                         preferred_element_type=jnp.float32)             # (TQ, N)
    st = st - jnp.max(st, axis=-1, keepdims=True)
    et = jnp.exp(st)
    true = et * pl.reciprocal(jnp.sum(et, axis=-1, keepdims=True), approx=False)

    # --- predicted attention: softmax(qf . kf^T).  qf computed per tile from
    # the resident hidden block (one K=D matmul + one exp); operands stay f32
    # because hedgehog scores are unnormalized sums of exponentials.
    qf = jnp.exp(jnp.dot(h_tile, wq_ref[...],
                         preferred_element_type=jnp.float32) + bq_ref[...])  # (TQ, 2D)
    s = lax.dot_general(qf, kf_ref[0], (((1,), (1,)), ((), ())),
                        preferred_element_type=jnp.float32)              # (TQ, N)
    s = s - jnp.max(s, axis=-1, keepdims=True)
    e = jnp.exp(s)
    pred = e * pl.reciprocal(jnp.sum(e, axis=-1, keepdims=True), approx=False)
    return true, pred


def hedgehog_kernel(h_ref, kf_ref, wq_ref, bq_ref, pred_ref, true_ref, ce_ref):
    qi = pl.program_id(1)
    tq = pred_ref.shape[1]

    true, pred = _attend_tile(h_ref, kf_ref, wq_ref, bq_ref, qi, tq)

    # Store `true` first; read it back (bf16) for the CE term so its f32 copy
    # is not live across the rest of the tile (bounds peak (TQ, N) temps).
    true_ref[0] = true.astype(true_ref.dtype)
    pred_ref[0] = pred.astype(pred_ref.dtype)

    t = true_ref[0].astype(jnp.float32)
    # -sum(true * log(pred + 1e-9)) per row: XLU lane-reduce, negate once on
    # the (TQ, 1) result instead of per element.  Keeps the module's exact
    # +1e-9 clamp (a logsumexp shortcut diverges when pred underflows).
    ce_ref[0] = -jnp.sum(t * jnp.log(pred + 1e-9), axis=-1, keepdims=True)


def hedgehog_loss_kernel(h_ref, kf_ref, wq_ref, bq_ref, ce_ref):
    qi = pl.program_id(1)
    tq = ce_ref.shape[1]
    true, pred = _attend_tile(h_ref, kf_ref, wq_ref, bq_ref, qi, tq)
    ce_ref[0] = -jnp.sum(true * jnp.log(pred + 1e-9), axis=-1, keepdims=True)


# ----------------------------- wrappers --------------------------------------


def _fused_feature_params(w, b):
    # nn.Linear: y = x @ W^T + b ;  [exp(y), exp(-y)] == exp(x @ [W^T|-W^T] + [b|-b])
    wf = jnp.concatenate([w.T, -w.T], axis=1).astype(jnp.float32)        # (D, 2D)
    bf = jnp.concatenate([b, -b]).reshape(1, -1).astype(jnp.float32)     # (1, 2D)
    return wf, bf


def _key_features(h, wk_f, bk_f):
    """Precompute kf = [exp(xk), exp(-xk)] for the whole batch (tiny matmul)."""
    B, N, D = h.shape
    tn = next((t for t in (1024, 512, 256, 128) if N % t == 0), N)
    return pl.pallas_call(
        feature_map_kernel,
        out_shape=jax.ShapeDtypeStruct((B, N, 2 * D), jnp.float32),
        grid_spec=pltpu.PrefetchScalarGridSpec(
            num_scalar_prefetch=0,
            grid=(B, N // tn),
            in_specs=[pl.BlockSpec((1, tn, D), lambda b, i: (b, i, 0)),
                      pl.BlockSpec((D, 2 * D), lambda b, i: (0, 0)),
                      pl.BlockSpec((1, 2 * D), lambda b, i: (0, 0))],
            out_specs=pl.BlockSpec((1, tn, 2 * D), lambda b, i: (b, i, 0))),
        compiler_params=pltpu.CompilerParams(
            dimension_semantics=("parallel", "parallel")),
    )(h, wk_f, bk_f)


def _in_specs(N, D):
    return [
        pl.BlockSpec((1, N, D), lambda b, qi: (b, 0, 0)),       # hidden (resident)
        pl.BlockSpec((1, N, 2 * D), lambda b, qi: (b, 0, 0)),   # key features
        pl.BlockSpec((D, 2 * D), lambda b, qi: (0, 0)),         # fused Wq
        pl.BlockSpec((1, 2 * D), lambda b, qi: (0, 0)),         # fused bq
    ]


def hedgehog_attention(hidden_states, wq, bq, wk, bk, *, out_dtype=jnp.bfloat16):
    """Training-mode forward: returns (loss, pred_attn, true_attn)."""
    B, N, D = hidden_states.shape
    h = hidden_states.astype(jnp.float32)
    wq_f, bq_f = _fused_feature_params(wq, bq)
    wk_f, bk_f = _fused_feature_params(wk, bk)
    kf = _key_features(h, wk_f, bk_f)

    budget = _vmem_budget_bytes()
    TQ = _pick_query_tile(N, D, with_outputs=True, budget=budget)

    pred, true, ce = pl.pallas_call(
        hedgehog_kernel,
        out_shape=(jax.ShapeDtypeStruct((B, N, N), out_dtype),
                   jax.ShapeDtypeStruct((B, N, N), out_dtype),
                   jax.ShapeDtypeStruct((B, N, 1), jnp.float32)),
        grid_spec=pltpu.PrefetchScalarGridSpec(
            num_scalar_prefetch=0,
            grid=(B, N // TQ),
            in_specs=_in_specs(N, D),
            out_specs=[pl.BlockSpec((1, TQ, N), lambda b, qi: (b, qi, 0)),
                       pl.BlockSpec((1, TQ, N), lambda b, qi: (b, qi, 0)),
                       pl.BlockSpec((1, TQ, 1), lambda b, qi: (b, qi, 0))]),
        compiler_params=_compiler_params(budget),
    )(h, kf, wq_f, bq_f)

    # torch.mean(torch.sum(-t * log(p + eps), dim=-1)) == mean over (B, N)
    loss = jnp.mean(ce)
    return loss, pred, true


def hedgehog_attention_loss_only(hidden_states, wq, bq, wk, bk):
    """Loss-only variant: skips the O(B*N^2) pred/true HBM writes entirely."""
    B, N, D = hidden_states.shape
    h = hidden_states.astype(jnp.float32)
    wq_f, bq_f = _fused_feature_params(wq, bq)
    wk_f, bk_f = _fused_feature_params(wk, bk)
    kf = _key_features(h, wk_f, bk_f)

    budget = _vmem_budget_bytes()
    TQ = _pick_query_tile(N, D, with_outputs=False, budget=budget)

    ce = pl.pallas_call(
        hedgehog_loss_kernel,
        out_shape=jax.ShapeDtypeStruct((B, N, 1), jnp.float32),
        grid_spec=pltpu.PrefetchScalarGridSpec(
            num_scalar_prefetch=0,
            grid=(B, N // TQ),
            in_specs=_in_specs(N, D),
            out_specs=pl.BlockSpec((1, TQ, 1), lambda b, qi: (b, qi, 0))),
        compiler_params=_compiler_params(budget),
    )(h, kf, wq_f, bq_f)
    return jnp.mean(ce)


# ----------------------------- reference / test -------------------------------


def _reference(hidden_states, wq, bq, wk, bk):
    """Pure-JAX reference mirroring the PyTorch forward."""
    h = hidden_states.astype(jnp.float32)
    xq = h @ wq.T + bq
    xk = h @ wk.T + bk
    q = jnp.concatenate([jnp.exp(xq), jnp.exp(-xq)], axis=-1)
    k = jnp.concatenate([jnp.exp(xk), jnp.exp(-xk)], axis=-1)
    scores = jnp.einsum("bmd,bnd->bmn", q, k)
    pred = jax.nn.softmax(scores, axis=-1)
    d = h.shape[-1]
    true = jax.nn.softmax(
        jnp.einsum("bmd,bnd->bmn", h, h) / math.sqrt(d), axis=-1)
    loss = jnp.mean(jnp.sum(-true * jnp.log(pred + 1e-9), axis=-1))
    return loss, pred, true


if __name__ == "__main__":
    B, N, D = 2, 8, 32
    key = jax.random.PRNGKey(0)
    hidden_states = jax.random.normal(key, (B, N, D), dtype=jnp.float32)

    # HedgehogFeatureMap params, initialized exactly as init_weights():
    wq = jnp.eye(D, dtype=jnp.float32)
    bq = jnp.zeros((D,), dtype=jnp.float32)
    wk = jnp.eye(D, dtype=jnp.float32)
    bk = jnp.zeros((D,), dtype=jnp.float32)

    loss, pred_attn, true_attn = hedgehog_attention(hidden_states, wq, bq, wk, bk)
    loss_only = hedgehog_attention_loss_only(hidden_states, wq, bq, wk, bk)
    jax.block_until_ready((loss, pred_attn, true_attn, loss_only))

    ref_loss, ref_pred, ref_true = _reference(hidden_states, wq, bq, wk, bk)
    # pred/true are emitted as bf16 probabilities in [0, 1] -> abs error ~4e-3.
    assert jnp.allclose(pred_attn.astype(jnp.float32), ref_pred,
                        atol=8e-3, rtol=2e-2), "pred_attn mismatch"
    assert jnp.allclose(true_attn.astype(jnp.float32), ref_true,
                        atol=8e-3, rtol=2e-2), "true_attn mismatch"
    assert jnp.allclose(loss, ref_loss, atol=1e-2, rtol=1e-2), "loss mismatch"
    assert jnp.allclose(loss_only, ref_loss, atol=1e-2, rtol=1e-2), "loss-only mismatch"

    print("KERNEL_OK")
</pallas_src>

<mosaic_0001>
module attributes {stable_mosaic.version = 11 : i64} {
  func.func @feature_map_kernel(%arg0: i32, %arg1: i32, %arg2: memref<1x8x32xf32, #tpu.memory_space<vmem>>, %arg3: memref<32x64xf32, #tpu.memory_space<vmem>>, %arg4: memref<1x64xf32, #tpu.memory_space<vmem>>, %arg5: memref<1x8x64xf32, #tpu.memory_space<vmem>>) attributes {dimension_semantics = [#tpu.dimension_semantics<parallel>, #tpu.dimension_semantics<parallel>], iteration_bounds = array<i64: 2, 1>, scalar_prefetch = 0 : i64, scratch_operands = 0 : i64, tpu.core_type = #tpu.core_type<tc>, window_params = [{transform_indices = @transform_0, window_bounds = array<i64: 1, 8, 32>}, {pipeline_mode = #tpu.pipeline_mode<synchronous>, transform_indices = @transform_1, window_bounds = array<i64: 32, 64>}, {pipeline_mode = #tpu.pipeline_mode<synchronous>, transform_indices = @transform_2, window_bounds = array<i64: 1, 64>}, {transform_indices = @transform_3, window_bounds = array<i64: 1, 8, 64>}]} {
    %c0 = arith.constant 0 : index
    %c0_0 = arith.constant 0 : index
    %c0_1 = arith.constant 0 : index
    %0 = vector.load %arg2[%c0, %c0_0, %c0_1] : memref<1x8x32xf32, #tpu.memory_space<vmem>>, vector<1x8x32xf32>
    %1 = vector.shape_cast %0 : vector<1x8x32xf32> to vector<8x32xf32>
    %c0_2 = arith.constant 0 : index
    %c0_3 = arith.constant 0 : index
    %2 = vector.load %arg3[%c0_2, %c0_3] : memref<32x64xf32, #tpu.memory_space<vmem>>, vector<32x64xf32>
    %cst = arith.constant dense<0.000000e+00> : vector<8x64xf32>
    %3 = tpu.matmul %1, %2, %cst {dimension_numbers = #tpu.dot_dimension_numbers<[1], [0], [0], [1], [0, 0, 1, 1], [], []>} : vector<8x32xf32>, vector<32x64xf32>, vector<8x64xf32> -> vector<8x64xf32>
    %c0_4 = arith.constant 0 : index
    %c0_5 = arith.constant 0 : index
    %4 = vector.load %arg4[%c0_4, %c0_5] : memref<1x64xf32, #tpu.memory_space<vmem>>, vector<1x64xf32>
    %5 = vector.broadcast %4 : vector<1x64xf32> to vector<8x64xf32>
    %6 = arith.addf %3, %5 : vector<8x64xf32>
    %7 = math.exp %6 : vector<8x64xf32>
    %c0_6 = arith.constant 0 : index
    %c0_7 = arith.constant 0 : index
    %c0_8 = arith.constant 0 : index
    %8 = vector.load %arg5[%c0_6, %c0_7, %c0_8] : memref<1x8x64xf32, #tpu.memory_space<vmem>>, vector<1x8x64xf32>
    %9 = vector.shape_cast %8 : vector<1x8x64xf32> to vector<8x64xf32>
    %10 = vector.shape_cast %7 : vector<8x64xf32> to vector<1x8x64xf32>
    tpu.vector_store %arg5[%c0_6, %c0_7, %c0_8], %10 {strides = array<i32>} : memref<1x8x64xf32, #tpu.memory_space<vmem>>, vector<1x8x64xf32>,
    return
  }
  func.func @transform_0(%arg0: i32, %arg1: i32) -> (i32, i32, i32) {
    %c0_i32 = arith.constant 0 : i32
    %c0_i32_0 = arith.constant 0 : i32
    return %arg0, %arg1, %c0_i32 : i32, i32, i32
  }
  func.func @transform_1(%arg0: i32, %arg1: i32) -> (i32, i32) {
    %c0_i32 = arith.constant 0 : i32
    %c0_i32_0 = arith.constant 0 : i32
    %c0_i32_1 = arith.constant 0 : i32
    return %c0_i32, %c0_i32_0 : i32, i32
  }
  func.func @transform_2(%arg0: i32, %arg1: i32) -> (i32, i32) {
    %c0_i32 = arith.constant 0 : i32
    %c0_i32_0 = arith.constant 0 : i32
    %c0_i32_1 = arith.constant 0 : i32
    return %c0_i32, %c0_i32_0 : i32, i32
  }
  func.func @transform_3(%arg0: i32, %arg1: i32) -> (i32, i32, i32) {
    %c0_i32 = arith.constant 0 : i32
    %c0_i32_0 = arith.constant 0 : i32
    return %arg0, %arg1, %c0_i32 : i32, i32, i32
  }
}

</mosaic_0001>

<bundles_post_ra>
// kernel: tpu_custom_call.1
= control target key start
LH: loop header
LB: loop body
LE: loop exit
PB: predicated region body
PF: predicated region fallthrough
CT: control target
= control target key end

     0   :  { %8 = vsyncpa [#allocation3], 0  ;;  %s777_s0 = inlined_call_operand.hbm [shape: f32[2,8,32], index: 0, kind: input, shape index: {}]   ;;  %s778_s1 = inlined_call_operand.hbm [shape: f32[32,64], index: 1, kind: input, shape index: {}]   ;;  %s779_s2 = inlined_call_operand.vmem [shape: f32[1,64], index: 2, kind: input, shape index: {}]   ;;  %s780_s3 = inlined_call_operand.hbm [shape: f32[2,8,64], index: 3, kind: output, shape index: {}]  }
   0x1   :  { %10 = vsyncpa [#allocation3 + $0x1], 0 }
   0x2   :  { %11 = vsyncpa [#allocation6], 0 }
   0x3   :  { %12 = vsyncpa [#allocation4], 0 }
   0x4   :  { %14 = vsyncpa [#allocation4 + $0x1], 0  ;;  %s631_s12 = smov 0   ;;  %s633_s13 = smov 0  }
   0x5   :  { %s635_s14 = smov 0   ;;  %s637_s15 = smov 0  }
   0x6   :  { %s639_s16 = smov 0   ;;  %s641_s17 = smov 0  }
   0x7 LB: > { %s366_s18 = sadd.s32 4294967295, %s606_s17   ;;  %p368_p0 = scmp.ge.s32.totalorder %s606_s17, 1  ;;  %s606_s17 = sphi %s641_s17, %s20_s17   ;;  %s602_s16 = sphi %s639_s16, %s791_s16   ;;  %s598_s15 = sphi %s637_s15, %s790_s15   ;;  %s594_s14 = sphi %s635_s14, %s789_s14   ;;  %s590_s13 = sphi %s633_s13, %s788_s13   ;;  %s586_s12 = sphi %s631_s12, %s787_s12  }
   0x8   : > { %p663_p1 = scmp.eq.s32.totalorder %s366_s18, 0  ;;  %p135_p2 = scmp.lt.s32.totalorder %s606_s17, 3 }
   0x9   : > { %s146_s22 = sshll.u32 %s778_s1, 4  ;;  %s608_s24 = smov [#allocation5]   ;;  %s147_s22 = int_to_ptr.hbm [resolvable:$true] %s146_s22 }
   0xa   : > { %p671_p3 = pnand %p368_p0, %p135_p2  ;;  %s148_s25 = sshll.u32 %s608_s24, 4  ;;  %s149_s25 = int_to_ptr.vmem [resolvable:$true] %s148_s25 }
   0xb   : > { %p370_p6 = scmp.ge.s32.totalorder %s606_s17, 2  ;;  %s609_s26 = smov 128  }
   0xc   : > { %p390_p4 = pneg %p671_p3  ;;  %s610_s27 = smov 8  }
   0xd   : > { %s367_s28 = sadd.s32 4294967294, %s606_s17   ;;  %s32_s29 = sadd.s32 1, %s602_s16 }
   0xe   : > { %p391_p5 = pnand %p390_p4, %p663_p1  ;;  %s41_s30 = sadd.s32 1, %s594_s14 }
   0xf   : > { %p34_p7 = scmp.ge.s32.totalorder %s32_s29, 2  ;;  %p48_p8 = scmp.ne.s32.totalorder %s594_s14, %s590_s13 }
  0x10   : > { %393 = dma.hbm_to_vmem [thread:$0]  (!%p391_p5), %s147_s22, 512, %s149_s25, [#allocation6], %s609_s26, %s609_s26, %s610_s27  }
  0x11   : > { %p49_p9 = scmp.eq.s32.totalorder %s606_s17, 0  ;;  %p54_p10 = scmp.ne.s32.totalorder %s590_s13, %s586_s12 }
  0x12   : > { %s793_s29 = smov (%p34_p7, %s32_s29), 0  ;;  %p122_p13 = scmp.eq.s32.totalorder %s366_s18, 1 }
  0x13   : > { %p690_p11 = por %p49_p9, %p48_p8  ;;  %p696_p12 = por %p663_p1, %p54_p10 }
  0x14   : > { %s36_s6 = ssub.s32 %s602_s16, %s793_s29  ;;  %p128_p2 = scmp.eq.s32.totalorder %s367_s28, 1 }
  0x15   : > { %p39_p0 = scmp.eq.s32.totalorder %s36_s6, 0  ;;  %p702_p4 = por %p122_p13, %p48_p8 }
  0x16   : > { %p403_p5 = scmp.lt.s32.totalorder %s606_s17, 2  ;;  %p710_p7 = por %p128_p2, %p54_p10 }
  0x17   : > { %s708_s8 = scalar_select %p39_p0, %s594_s14, %s41_s30  }
  0x18   : > { %s165_s10 = sand.u32 1, %s594_s14   ;;  %s372_s20 = sshll.u32 %s602_s16, 3 }
  0x19   : > { %s371_s11 = sshll.u32 %s165_s10, 3  ;;  %s174_s18 = scalar_lea.hbm %s777_s0, %s372_s20 }
  0x1a   : > { %s169_s24 = scalar_lea.vmem [#allocation2], %s371_s11  ;;  %s176_s26 = sshll.u32 %s174_s18, 4  ;;  %s177_s26 = int_to_ptr.hbm [resolvable:$true] %s176_s26 }
  0x1b   : > { %s178_s25 = sshll.u32 %s169_s24, 4  ;;  %p395_p8 = pnand %p403_p5, %p690_p11  ;;  %s179_s25 = int_to_ptr.vmem [resolvable:$true] %s178_s25 }
  0x1c   : > { %s166_s27 = scalar_lea.sflag [#allocation3], %s165_s10  ;;  %187 = sbr.rel (%p671_p3) target bundleno = 184 (0xb8), region = 32 }
  0x1d   : > { %397 = dma.hbm_to_vmem [thread:$0]  (!%p395_p8), %s177_s26, 128, %s179_s25, %s166_s27  }
  0x1e   : > { %s724_s28 = sand.u32 (!%p671_p3), 1, %s590_s13  }
  0x1f   : > { %s374_s30 = sshll.u32 (!%p671_p3), %s724_s28, 3  ;;  %s190_s6 = scalar_lea.sflag (!%p671_p3), [#allocation3], %s724_s28 }
  0x20   : > { %s193_s11 = scalar_lea.vmem (!%p671_p3), [#allocation2], %s374_s30 }
  0x21   : > { %573 = dma.done.wait (%p696_p12), %s190_s6, 128  }
  0x22   : > { %575 = vsyncadd (%p696_p12), %s190_s6, 4294967168 }
  0x23   : > { %577 = dma.done.wait (%p663_p1), [#allocation6], 512  }
  0x24   : > { %579 = vsyncadd (%p663_p1), [#allocation6], 4294966784  ;;  %v226_v0 = vld [vmem:[#allocation5 + $0x18] sm:$0xff]  ;;  %v225_v1 = vld [vmem:[#allocation5 + $0x10] sm:$0xff]  ;;  %vm231_vm0 = vcmask 261120   ;;  %s379_s19 = sshll.u32 %s598_s15, 3 }
  0x25   : > { %247 = vmatpush.msra.mxu0 %v226_v0  ;;  %v224_v2 = vld [vmem:[#allocation5 + $0x8] sm:$0xff]  ;;  %v223_v3 = vld [vmem:[#allocation5] sm:$0xff]  ;;  %v222_v4 = vld [vmem:[%s193_s11] sm:$0xff]  ;;  %s271_s20 = scalar_lea.hbm %s780_s3, %s379_s19  ;;  %s221_s21 = scalar_lea.vmem [#allocation7], %s374_s30  ;;  %vm257_vm1 = vcmask 523264  }
  0x26   : > { %v457_v5 = vld [vmem:[%s779_s2] ss:$0 sm:$0xff]  ;;  %s273_s22 = sshll.u32 %s221_s21, 4  ;;  %s275_s18 = sshll.u32 %s271_s20, 4  ;;  %s274_s22 = int_to_ptr.vmem [resolvable:$true] %s273_s22  ;;  %s276_s18 = int_to_ptr.hbm [resolvable:$true] %s275_s18 }
  0x27   : > { %248 = vmatpush.msra.mxu0 %v225_v1  ;;  %s260_s24 = scalar_lea.sflag [#allocation4], %s724_s28  ;;  %s534_s25 = sshra.s32 %s276_s18, 4  ;;  %s535_s25 = int_to_ptr.hbm [resolvable:$true] %s534_s25 }
  0x28   : > { %s536_s26 = scalar_lea.hbm %s535_s25, 8  ;;  %s540_s6 = scalar_lea.hbm %s780_s3, 16 }
  0x29   : > { %249 = vmatpush.msra.mxu0 %v224_v2  ;;  %p537_p1 = scmp.ne.s32.totalorder %s535_s25, %s536_s26  ;;  %p541_p10 = scmp.lt.s32.totalorder %s535_s25, %s780_s3 }
  0x2a   : > { %p542_p11 = scmp.lt.s32.totalorder %s540_s6, %s536_s26 }
  0x2b   : > { %250 = vmatpush.msra.mxu0 %v223_v3  ;;  %p538_p3 = pnand %p537_p1, %p702_p4 }
  0x2c   : > { %377 = vmatmul.msk.f32.vlgmr.msra.gmra.mxu0 %vm231_vm0, %v222_v4  ;;  %p543_p12 = por %p542_p11, %p541_p10 }
  0x2d   : > { %p539_p9 = pneg %p538_p3 }
  0x2f   : > { %p544_p13 = pnand %p543_p12, %p539_p9 }
  0xa9   : > { %v252_v6 = vpop.f32.mrf.mxu0 }
  0xaa   : > { %v253_v7 = vadd.f32 %v457_v5, %v252_v6 }
  0xac   : > { %v255_v8 = vmul.f32 1.442695, %v253_v7 }
  0xae   : > { %458 = vpow2.f32 %v255_v8 }
  0xb4   : > { %v459_v9 = vpop.eup %458 }
  0xb5   : > { %258 = vst.msk [vmem:[%s221_s21] sm:$0xff] %vm257_vm1, %v459_v9 }
  0xb6   : > { %547 = shalt.err (!%p544_p13)
}
  0xb7   : > { %388 = dma.vmem_to_hbm [thread:$0]  (%p702_p4), %s274_s22, 128, %s276_s18, %s260_s24  }
  0xb8 PF: > { %s287_s28 = sand.u32 1, %s586_s12   ;;  %p399_p0 = pnand %p370_p6, %p710_p7 }
  0xb9   : > { %s288_s23 = scalar_lea.sflag [#allocation4], %s287_s28 }
  0xba   : > { %p400_p2 = pneg %p399_p0 }
  0xbc   : > { %581 = dma.done.wait (%p400_p2), %s288_s23, 128  }
  0xbd   : > { %583 = vsyncadd (%p400_p2), %s288_s23, 4294967168  ;;  %s20_s17 = sadd.s32 1, %s606_s17   ;;  %s787_s12 = smov %s590_s13 }
  0xbe   : > { %p17_p5 = scmp.ge.s32.totalorder %s20_s17, 4   ;;  %s788_s13 = smov %s594_s14 }
  0xbf   : > { %s789_s14 = smov %s708_s8  ;;  %s790_s15 = smov %s602_s16 }
  0xc0   : > { %s791_s16 = smov %s793_s29  ;;  %19 = sbr.rel (!%p17_p5) target bundleno = 7 (0x7), region = 81 }
  0xc5   :  { %294 = vsyncpa [#allocation3], 1 }
  0xc6   :  { %296 = vsyncpa [#allocation3 + $0x1], 1 }
  0xc7   :  { %297 = vsyncpa [#allocation6], 1 }
  0xc8   :  { %298 = vsyncpa [#allocation4], 1 }
  0xc9   :  { %300 = vsyncpa [#allocation4 + $0x1], 1 }

</bundles_post_ra>
